<compile_context>
chip_gen: v7x
topology: tpu7x:2x2x1
jax: 0.10.0
libtpu: 0.0.40
codegen_flags: <defaults>
</compile_context>

<pallas_src>
import functools

import jax
import jax.numpy as jnp
from jax import lax
from jax.experimental import pallas as pl
from jax.experimental.pallas import tpu as pltpu

_LANES = 128


def _focal_kernel(x_ref, t_ref, out_ref, acc_ref, *, C, alpha, gamma, ignore_index):
    j = pl.program_id(1)

    @pl.when(j == 0)
    def _init():
        acc_ref[...] = jnp.zeros_like(acc_ref)

    t = t_ref[0, 0].astype(jnp.int32)               # (S_BLK, 128) labels

    def row(c):
        return x_ref[0, c]                          # (S_BLK, 128) logits of class c, native dtype

    # Running max in the native dtype (bf16 stays on packed (16,128) vregs), upcast once.
    m_nat = row(0)
    for c in range(1, C):
        m_nat = jnp.maximum(m_nat, row(c))
    m = m_nat.astype(jnp.float32)

    # exp/sum pass; the same `t == c` select picks both the target logit and its exponent.
    s = jnp.zeros_like(m)
    tgt = jnp.zeros_like(m)
    et = jnp.zeros_like(m)
    for c in range(C):
        xc = row(c).astype(jnp.float32)
        e = jnp.exp(xc - m)
        s = s + e
        hit = t == c
        tgt = jnp.where(hit, xc, tgt)
        et = jnp.where(hit, e, et)

    ce = (jnp.log(s) + m) - tgt                     # log-softmax cross entropy
    pt = et * pl.reciprocal(s, approx=True)         # == exp(-ce), without a second EUP exp
    omp = 1.0 - pt
    g = float(gamma)
    if g == 2.0:
        mod = omp * omp                             # fast path, no pow
    elif g.is_integer() and g >= 0.0:
        mod = lax.integer_pow(omp, int(g))
    else:
        mod = jnp.power(jnp.maximum(omp, 0.0), g)
    focal = mod * ce
    if float(alpha) != 1.0:
        focal = focal * jnp.float32(alpha)

    # ignore_index pixels and padded pixels (labels are padded with ignore_index, which also
    # kills any garbage from the ragged last logits block) contribute exactly 0.
    acc_ref[...] += jnp.where(t != ignore_index, focal, 0.0)

    @pl.when(j == pl.num_programs(1) - 1)
    def _finalize():
        # Per-batch partial: sublane-reduce once, lane-dense 128-wide store.
        out_ref[0, 0, :] = jnp.sum(acc_ref[...], axis=0)


def focal_loss(inputs, targets, *, alpha=1.0, gamma=2.0, size_average=True,
               ignore_index=255, target_block_bytes=4 << 20):
    """inputs: (N, C, H, W) float logits (NCHW, like PyTorch); targets: (N, H, W) int labels."""
    N, C, H, W = inputs.shape
    HW = H * W
    R = N * HW                                      # denominator for .mean()

    x = inputs.reshape(N, C, HW)                    # metadata-only reshape (no HBM copy)
    HW_pad = pl.cdiv(HW, _LANES) * _LANES
    if HW_pad != HW:
        # TODO(synk): rare H*W % 128 != 0 case still pads logits (one extra HBM pass);
        # could be avoided with an in-kernel lane mask on an un-reshaped (N,C,HW) layout.
        x = jnp.pad(x, ((0, 0), (0, 0), (0, HW_pad - HW)))
    S_total = HW_pad // _LANES
    x = x.reshape(N, C, S_total, _LANES)

    # Block sizing: ~target_block_bytes of logits per grid step so the fixed per-step
    # overhead is hidden; rows rounded to a multiple of 32 so uint8 label tiles stay on
    # native (32,128) tiles.
    itemsize = jnp.dtype(x.dtype).itemsize
    sblk = int(target_block_bytes // (C * _LANES * itemsize))
    sblk = max(8, min(sblk, 2048))
    if S_total <= sblk:
        S_BLK, T = S_total, 1
    else:
        if sblk >= 32:
            sblk = (sblk // 32) * 32
        else:
            sblk = max(8, (sblk // 8) * 8)
        S_BLK = sblk
        T = int(pl.cdiv(S_total, S_BLK))

    # Labels: narrow to uint8 when class ids + ignore_index fit (4x less HBM traffic than
    # int32); pad the cheap 1 B/pixel label stream out to the block grid with ignore_index
    # so no row/lane masks are needed in the kernel.
    use_u8 = (C <= 256) and (0 <= int(ignore_index) <= 255) and (T == 1 or S_BLK % 32 == 0)
    lab_dtype = jnp.uint8 if use_u8 else jnp.int32
    t = targets.reshape(N, HW).astype(lab_dtype)
    S_pad = T * S_BLK
    pad_pix = S_pad * _LANES - HW
    if pad_pix:
        t = jnp.pad(t, ((0, 0), (0, pad_pix)), constant_values=ignore_index)
    t = t.reshape(N, 1, S_pad, _LANES)

    # Scoped-VMEM budget: double-buffered blocks + accumulator + f32 temporaries headroom.
    x_blk = C * S_BLK * _LANES * itemsize
    t_blk = S_BLK * _LANES * jnp.dtype(lab_dtype).itemsize
    vmem_limit = int(2 * (x_blk + t_blk + _LANES * 4)
                     + 13 * S_BLK * _LANES * 4      # acc scratch + elementwise temps
                     + (2 << 20))
    vmem_limit = max(16 << 20, min(vmem_limit, 60 << 20))   # stay under v7x 64 MiB physical

    kernel = functools.partial(
        _focal_kernel, C=C, alpha=float(alpha), gamma=float(gamma),
        ignore_index=int(ignore_index))

    partials = pl.pallas_call(
        kernel,
        out_shape=jax.ShapeDtypeStruct((N, 1, _LANES), jnp.float32),
        grid_spec=pltpu.PrefetchScalarGridSpec(
            num_scalar_prefetch=0,
            grid=(N, T),
            in_specs=[
                pl.BlockSpec((1, C, S_BLK, _LANES), lambda n, j: (n, 0, j, 0)),
                pl.BlockSpec((1, 1, S_BLK, _LANES), lambda n, j: (n, 0, j, 0)),
            ],
            out_specs=pl.BlockSpec((1, 1, _LANES), lambda n, j: (n, 0, 0)),
            scratch_shapes=[pltpu.VMEM((S_BLK, _LANES), jnp.float32)],
        ),
        compiler_params=pltpu.CompilerParams(
            dimension_semantics=("parallel", "arbitrary"),
            vmem_limit_bytes=vmem_limit),
    )(x, t)

    total = jnp.sum(partials)
    if size_average:
        # PyTorch module: focal_loss.mean() over all N*H*W elements (ignored pixels are 0).
        return total / jnp.float32(R)
    return total


def _focal_loss_ref(inputs, targets, alpha=1.0, gamma=2.0, size_average=True, ignore_index=255):
    """Pure-JAX reference matching F.cross_entropy(reduction='none', ignore_index=...)."""
    N, C, H, W = inputs.shape
    x = jnp.transpose(inputs, (0, 2, 3, 1)).reshape(-1, C).astype(jnp.float32)
    t = targets.reshape(-1).astype(jnp.int32)
    lse = jax.scipy.special.logsumexp(x, axis=-1)
    safe_t = jnp.where(t == ignore_index, 0, t)
    tgt_logit = jnp.take_along_axis(x, safe_t[:, None], axis=-1)[:, 0]
    ce = jnp.where(t == ignore_index, 0.0, lse - tgt_logit)
    pt = jnp.exp(-ce)
    focal = alpha * (1.0 - pt) ** gamma * ce
    return focal.mean() if size_average else focal.sum()


if __name__ == "__main__":
    key = jax.random.PRNGKey(0)
    k1, k2 = jax.random.split(key)

    N, C, H, W = 2, 4, 16, 16
    logits = jax.random.normal(k1, (N, C, H, W), dtype=jnp.float32)
    labels = jax.random.randint(k2, (N, H, W), 0, C, dtype=jnp.int32)
    # sprinkle in some ignore_index labels to exercise the mask
    labels = labels.at[0, 0, :4].set(255)

    out = focal_loss(logits, labels)
    out = jax.block_until_ready(out)

    ref = _focal_loss_ref(logits, labels)
    assert jnp.allclose(out, ref, rtol=1e-3, atol=1e-5), (out, ref)

    print("KERNEL_OK")
</pallas_src>

<mosaic_0001>
module attributes {stable_mosaic.version = 11 : i64} {
  func.func @_focal_kernel(%arg0: i32, %arg1: i32, %arg2: memref<1x4x2x128xf32, #tpu.memory_space<vmem>>, %arg3: memref<1x1x2x128xi8, #tpu.memory_space<vmem>>, %arg4: memref<1x1x128xf32, #tpu.memory_space<vmem>>, %arg5: memref<2x128xf32, #tpu.memory_space<vmem>>) attributes {dimension_semantics = [#tpu.dimension_semantics<parallel>, #tpu.dimension_semantics<arbitrary>], iteration_bounds = array<i64: 2, 1>, scalar_prefetch = 0 : i64, scratch_operands = 1 : i64, tpu.core_type = #tpu.core_type<tc>, window_params = [{transform_indices = @transform_0, window_bounds = array<i64: 1, 4, 2, 128>}, {transform_indices = @transform_1, window_bounds = array<i64: 1, 1, 2, 128>}, {transform_indices = @transform_2, window_bounds = array<i64: 1, 1, 128>}]} {
    %c0_i32 = arith.constant 0 : i32
    %0 = arith.cmpi eq, %arg1, %c0_i32 : i32
    %1 = arith.extui %0 : i1 to i32
    %c0_i32_0 = arith.constant 0 : i32
    %2 = arith.cmpi ne, %1, %c0_i32_0 : i32
    scf.if %2 {
      %cst_44 = arith.constant 0.000000e+00 : f32
      %75 = vector.broadcast %cst_44 : f32 to vector<2x128xf32>
      %c0_45 = arith.constant 0 : index
      %c0_46 = arith.constant 0 : index
      %76 = vector.load %arg5[%c0_45, %c0_46] : memref<2x128xf32, #tpu.memory_space<vmem>>, vector<2x128xf32>
      tpu.vector_store %arg5[%c0_45, %c0_46], %75 {strides = array<i32>} : memref<2x128xf32, #tpu.memory_space<vmem>>, vector<2x128xf32>,
    } else {
    }
    %c0 = arith.constant 0 : index
    %c0_1 = arith.constant 0 : index
    %c0_2 = arith.constant 0 : index
    %c0_3 = arith.constant 0 : index
    %3 = vector.load %arg3[%c0, %c0_1, %c0_2, %c0_3] : memref<1x1x2x128xi8, #tpu.memory_space<vmem>>, vector<1x1x2x128xi8>
    %4 = vector.shape_cast %3 : vector<1x1x2x128xi8> to vector<2x128xi8>
    %5 = arith.extui %4 : vector<2x128xi8> to vector<2x128xi32>
    %c0_4 = arith.constant 0 : index
    %c0_5 = arith.constant 0 : index
    %c0_6 = arith.constant 0 : index
    %c0_7 = arith.constant 0 : index
    %6 = vector.load %arg2[%c0_4, %c0_5, %c0_6, %c0_7] : memref<1x4x2x128xf32, #tpu.memory_space<vmem>>, vector<1x1x2x128xf32>
    %7 = vector.shape_cast %6 : vector<1x1x2x128xf32> to vector<2x128xf32>
    %c0_8 = arith.constant 0 : index
    %c1 = arith.constant 1 : index
    %c0_9 = arith.constant 0 : index
    %c0_10 = arith.constant 0 : index
    %8 = vector.load %arg2[%c0_8, %c1, %c0_9, %c0_10] : memref<1x4x2x128xf32, #tpu.memory_space<vmem>>, vector<1x1x2x128xf32>
    %9 = vector.shape_cast %8 : vector<1x1x2x128xf32> to vector<2x128xf32>
    %10 = arith.maximumf %7, %9 : vector<2x128xf32>
    %c0_11 = arith.constant 0 : index
    %c2 = arith.constant 2 : index
    %c0_12 = arith.constant 0 : index
    %c0_13 = arith.constant 0 : index
    %11 = vector.load %arg2[%c0_11, %c2, %c0_12, %c0_13] : memref<1x4x2x128xf32, #tpu.memory_space<vmem>>, vector<1x1x2x128xf32>
    %12 = vector.shape_cast %11 : vector<1x1x2x128xf32> to vector<2x128xf32>
    %13 = arith.maximumf %10, %12 : vector<2x128xf32>
    %c0_14 = arith.constant 0 : index
    %c3 = arith.constant 3 : index
    %c0_15 = arith.constant 0 : index
    %c0_16 = arith.constant 0 : index
    %14 = vector.load %arg2[%c0_14, %c3, %c0_15, %c0_16] : memref<1x4x2x128xf32, #tpu.memory_space<vmem>>, vector<1x1x2x128xf32>
    %15 = vector.shape_cast %14 : vector<1x1x2x128xf32> to vector<2x128xf32>
    %16 = arith.maximumf %13, %15 : vector<2x128xf32>
    %cst = arith.constant 0.000000e+00 : f32
    %17 = vector.broadcast %cst : f32 to vector<2x128xf32>
    %cst_17 = arith.constant 0.000000e+00 : f32
    %18 = vector.broadcast %cst_17 : f32 to vector<2x128xf32>
    %cst_18 = arith.constant 0.000000e+00 : f32
    %19 = vector.broadcast %cst_18 : f32 to vector<2x128xf32>
    %c0_19 = arith.constant 0 : index
    %c0_20 = arith.constant 0 : index
    %c0_21 = arith.constant 0 : index
    %c0_22 = arith.constant 0 : index
    %20 = vector.load %arg2[%c0_19, %c0_20, %c0_21, %c0_22] : memref<1x4x2x128xf32, #tpu.memory_space<vmem>>, vector<1x1x2x128xf32>
    %21 = vector.shape_cast %20 : vector<1x1x2x128xf32> to vector<2x128xf32>
    %22 = arith.subf %21, %16 : vector<2x128xf32>
    %23 = math.exp %22 : vector<2x128xf32>
    %24 = arith.addf %17, %23 : vector<2x128xf32>
    %c0_i32_23 = arith.constant 0 : i32
    %25 = vector.broadcast %c0_i32_23 : i32 to vector<2x128xi32>
    %26 = arith.cmpi eq, %5, %25 : vector<2x128xi32>
    %27 = arith.select %26, %21, %18 : vector<2x128xi1>, vector<2x128xf32>
    %28 = arith.select %26, %23, %19 : vector<2x128xi1>, vector<2x128xf32>
    %c0_24 = arith.constant 0 : index
    %c1_25 = arith.constant 1 : index
    %c0_26 = arith.constant 0 : index
    %c0_27 = arith.constant 0 : index
    %29 = vector.load %arg2[%c0_24, %c1_25, %c0_26, %c0_27] : memref<1x4x2x128xf32, #tpu.memory_space<vmem>>, vector<1x1x2x128xf32>
    %30 = vector.shape_cast %29 : vector<1x1x2x128xf32> to vector<2x128xf32>
    %31 = arith.subf %30, %16 : vector<2x128xf32>
    %32 = math.exp %31 : vector<2x128xf32>
    %33 = arith.addf %24, %32 : vector<2x128xf32>
    %c1_i32 = arith.constant 1 : i32
    %34 = vector.broadcast %c1_i32 : i32 to vector<2x128xi32>
    %35 = arith.cmpi eq, %5, %34 : vector<2x128xi32>
    %36 = arith.select %35, %30, %27 : vector<2x128xi1>, vector<2x128xf32>
    %37 = arith.select %35, %32, %28 : vector<2x128xi1>, vector<2x128xf32>
    %c0_28 = arith.constant 0 : index
    %c2_29 = arith.constant 2 : index
    %c0_30 = arith.constant 0 : index
    %c0_31 = arith.constant 0 : index
    %38 = vector.load %arg2[%c0_28, %c2_29, %c0_30, %c0_31] : memref<1x4x2x128xf32, #tpu.memory_space<vmem>>, vector<1x1x2x128xf32>
    %39 = vector.shape_cast %38 : vector<1x1x2x128xf32> to vector<2x128xf32>
    %40 = arith.subf %39, %16 : vector<2x128xf32>
    %41 = math.exp %40 : vector<2x128xf32>
    %42 = arith.addf %33, %41 : vector<2x128xf32>
    %c2_i32 = arith.constant 2 : i32
    %43 = vector.broadcast %c2_i32 : i32 to vector<2x128xi32>
    %44 = arith.cmpi eq, %5, %43 : vector<2x128xi32>
    %45 = arith.select %44, %39, %36 : vector<2x128xi1>, vector<2x128xf32>
    %46 = arith.select %44, %41, %37 : vector<2x128xi1>, vector<2x128xf32>
    %c0_32 = arith.constant 0 : index
    %c3_33 = arith.constant 3 : index
    %c0_34 = arith.constant 0 : index
    %c0_35 = arith.constant 0 : index
    %47 = vector.load %arg2[%c0_32, %c3_33, %c0_34, %c0_35] : memref<1x4x2x128xf32, #tpu.memory_space<vmem>>, vector<1x1x2x128xf32>
    %48 = vector.shape_cast %47 : vector<1x1x2x128xf32> to vector<2x128xf32>
    %49 = arith.subf %48, %16 : vector<2x128xf32>
    %50 = math.exp %49 : vector<2x128xf32>
    %51 = arith.addf %42, %50 : vector<2x128xf32>
    %c3_i32 = arith.constant 3 : i32
    %52 = vector.broadcast %c3_i32 : i32 to vector<2x128xi32>
    %53 = arith.cmpi eq, %5, %52 : vector<2x128xi32>
    %54 = arith.select %53, %48, %45 : vector<2x128xi1>, vector<2x128xf32>
    %55 = arith.select %53, %50, %46 : vector<2x128xi1>, vector<2x128xf32>
    %56 = math.log %51 : vector<2x128xf32>
    %57 = arith.addf %56, %16 : vector<2x128xf32>
    %58 = arith.subf %57, %54 : vector<2x128xf32>
    %59 = tpu.reciprocal %51 {approx = true} : vector<2x128xf32> -> vector<2x128xf32>
    %60 = arith.mulf %55, %59 : vector<2x128xf32>
    %cst_36 = arith.constant 1.000000e+00 : f32
    %61 = vector.broadcast %cst_36 : f32 to vector<2x128xf32>
    %62 = arith.subf %61, %60 : vector<2x128xf32>
    %63 = arith.mulf %62, %62 : vector<2x128xf32>
    %64 = arith.mulf %63, %58 : vector<2x128xf32>
    %c0_37 = arith.constant 0 : index
    %c0_38 = arith.constant 0 : index
    %65 = vector.load %arg5[%c0_37, %c0_38] : memref<2x128xf32, #tpu.memory_space<vmem>>, vector<2x128xf32>
    %c255_i32 = arith.constant 255 : i32
    %66 = vector.broadcast %c255_i32 : i32 to vector<2x128xi32>
    %67 = arith.cmpi ne, %5, %66 : vector<2x128xi32>
    %cst_39 = arith.constant 0.000000e+00 : f32
    %68 = vector.broadcast %cst_39 : f32 to vector<2x128xf32>
    %69 = arith.select %67, %64, %68 : vector<2x128xi1>, vector<2x128xf32>
    %70 = arith.addf %65, %69 : vector<2x128xf32>
    %c0_40 = arith.constant 0 : index
    %c0_41 = arith.constant 0 : index
    %71 = vector.load %arg5[%c0_40, %c0_41] : memref<2x128xf32, #tpu.memory_space<vmem>>, vector<2x128xf32>
    tpu.vector_store %arg5[%c0_40, %c0_41], %70 {strides = array<i32>} : memref<2x128xf32, #tpu.memory_space<vmem>>, vector<2x128xf32>,
    %c0_i32_42 = arith.constant 0 : i32
    %72 = arith.cmpi eq, %arg1, %c0_i32_42 : i32
    %73 = arith.extui %72 : i1 to i32
    %c0_i32_43 = arith.constant 0 : i32
    %74 = arith.cmpi ne, %73, %c0_i32_43 : i32
    scf.if %74 {
      %c0_44 = arith.constant 0 : index
      %c0_45 = arith.constant 0 : index
      %75 = vector.load %arg5[%c0_44, %c0_45] : memref<2x128xf32, #tpu.memory_space<vmem>>, vector<2x128xf32>
      %cst_46 = arith.constant dense<0.000000e+00> : vector<128xf32>
      %76 = vector.multi_reduction <add>, %75, %cst_46 [0] : vector<2x128xf32> to vector<128xf32>
      %c0_47 = arith.constant 0 : index
      %c0_48 = arith.constant 0 : index
      %c0_49 = arith.constant 0 : index
      %77 = vector.load %arg4[%c0_47, %c0_48, %c0_49] : memref<1x1x128xf32, #tpu.memory_space<vmem>>, vector<1x1x128xf32>
      %78 = vector.shape_cast %77 : vector<1x1x128xf32> to vector<128xf32>
      %79 = vector.shape_cast %76 : vector<128xf32> to vector<1x1x128xf32>
      tpu.vector_store %arg4[%c0_47, %c0_48, %c0_49], %79 {strides = array<i32>} : memref<1x1x128xf32, #tpu.memory_space<vmem>>, vector<1x1x128xf32>,
    } else {
    }
    return
  }
  func.func @transform_0(%arg0: i32, %arg1: i32) -> (i32, i32, i32, i32) {
    %c0_i32 = arith.constant 0 : i32
    %c0_i32_0 = arith.constant 0 : i32
    %c0_i32_1 = arith.constant 0 : i32
    return %arg0, %c0_i32, %arg1, %c0_i32_0 : i32, i32, i32, i32
  }
  func.func @transform_1(%arg0: i32, %arg1: i32) -> (i32, i32, i32, i32) {
    %c0_i32 = arith.constant 0 : i32
    %c0_i32_0 = arith.constant 0 : i32
    %c0_i32_1 = arith.constant 0 : i32
    return %arg0, %c0_i32, %arg1, %c0_i32_0 : i32, i32, i32, i32
  }
  func.func @transform_2(%arg0: i32, %arg1: i32) -> (i32, i32, i32) {
    %c0_i32 = arith.constant 0 : i32
    %c0_i32_0 = arith.constant 0 : i32
    %c0_i32_1 = arith.constant 0 : i32
    return %arg0, %c0_i32, %c0_i32_0 : i32, i32, i32
  }
}

</mosaic_0001>

<bundles_post_ra>
// kernel: tpu_custom_call.1
= control target key start
LH: loop header
LB: loop body
LE: loop exit
PB: predicated region body
PF: predicated region fallthrough
CT: control target
= control target key end

     0   :  { %7 = vsyncpa [#allocation4], 0  ;;  %s781_s0 = inlined_call_operand.hbm [shape: f32[2,4,2,128], index: 0, kind: input, shape index: {}]   ;;  %s782_s1 = inlined_call_operand.vmem [shape: u8[2,1,2,128], index: 1, kind: input, shape index: {}]   ;;  %s783_s2 = inlined_call_operand.hbm [shape: f32[2,1,128], index: 2, kind: output, shape index: {}]  }
   0x1   :  { %9 = vsyncpa [#allocation4 + $0x1], 0 }
   0x2   :  { %10 = vsyncpa [#allocation5], 0 }
   0x3   :  { %12 = vsyncpa [#allocation5 + $0x1], 0  ;;  %s602_s9 = smov 0   ;;  %s604_s10 = smov 0  }
   0x4   :  { %s606_s11 = smov 0   ;;  %s608_s12 = smov 0  }
   0x5   :  { %s610_s13 = smov 0   ;;  %s612_s14 = smov 0  }
   0x6 LB: > { %s375_s15 = sadd.s32 4294967295, %s580_s14   ;;  %s376_s16 = sadd.s32 4294967294, %s580_s14   ;;  %s580_s14 = sphi %s612_s14, %s18_s14   ;;  %s576_s13 = sphi %s610_s13, %s798_s13   ;;  %s572_s12 = sphi %s608_s12, %s797_s12   ;;  %s568_s11 = sphi %s606_s11, %s796_s11   ;;  %s564_s10 = sphi %s604_s10, %s795_s10   ;;  %s560_s9 = sphi %s602_s9, %s794_s9  }
   0x7   : > { %s30_s17 = sadd.s32 1, %s576_s13  ;;  %s39_s18 = sadd.s32 1, %s568_s11 }
   0x8   : > { %p32_p0 = scmp.ge.s32.totalorder %s30_s17, 2  ;;  %p46_p1 = scmp.ne.s32.totalorder %s568_s11, %s564_s10 }
   0x9   : > { %p47_p2 = scmp.eq.s32.totalorder %s580_s14, 0  ;;  %p52_p3 = scmp.ne.s32.totalorder %s564_s10, %s560_s9 }
   0xa   : > { %s800_s17 = smov (%p32_p0, %s30_s17), 0  ;;  %p53_p5 = scmp.eq.s32.totalorder %s375_s15, 0 }
   0xb   : > { %p643_p4 = por %p47_p2, %p46_p1  ;;  %s34_s20 = ssub.s32 %s576_s13, %s800_s17 }
   0xc   : > { %p104_p6 = scmp.eq.s32.totalorder %s375_s15, 1  ;;  %p37_p7 = scmp.eq.s32.totalorder %s34_s20, 0 }
   0xd   : > { %p649_p8 = por %p53_p5, %p52_p3  ;;  %p110_p10 = scmp.eq.s32.totalorder %s376_s16, 1 }
   0xe   : > { %p653_p9 = por %p104_p6, %p46_p1  ;;  %p403_p13 = scmp.lt.s32.totalorder %s580_s14, 2 }
   0xf   : > { %s658_s23 = scalar_select %p37_p7, %s568_s11, %s39_s18  }
  0x10   : > { %s787_s22 = scalar_select %p653_p9, 1, 0 }
  0x11   : > { %p660_p11 = por %p110_p10, %p52_p3  ;;  %s130_s25 = sand.u32 1, %s568_s11  }
  0x12   : > { %s379_s26 = sshll.u32 %s130_s25, 3  ;;  %s390_s27 = sshll.u32 %s576_s13, 7 }
  0x13   : > { %s788_s24 = scalar_select %p660_p11, 1, 0 }
  0x14   : > { %s671_s30 = scalar_lea.hbm %s781_s0, %s390_s27  ;;  %s134_s3 = scalar_lea.vmem [#allocation3], %s379_s26 }
  0x15   : > { %s142_s4 = sshll.u32 %s134_s3, 4  ;;  %p677_p0 = pnand %p403_p13, %p643_p4  ;;  %s673_s4 = int_to_ptr.vmem [resolvable:$true] %s142_s4 }
  0x16   : > { %s682_s6 = scalar_lea.sflag [#allocation4], %s130_s25  ;;  %s468_s7 = scalar_lea.hbm %s671_s30, 128 }
  0x17   : > { %p469_p2 = scmp.ne.s32.totalorder %s671_s30, %s468_s7  ;;  %p470_p3 = pneg %p677_p0 }
  0x18   : > { %s473_s16 = scalar_lea.hbm %s781_s0, 256  ;;  %p474_p4 = scmp.lt.u32.totalorder %s671_s30, %s781_s0 }
  0x19   : > { %p471_p5 = pnand %p470_p3, %p469_p2  ;;  %p475_p7 = scmp.lt.u32.totalorder %s473_s16, %s468_s7 }
  0x1a   : > { %p477_p13 = scmp.lt.u32.totalorder %s468_s7, %s671_s30 }
  0x1b   : > { %p472_p6 = pneg %p471_p5  ;;  %p476_p10 = por %p475_p7, %p474_p4 }
  0x1d   : > { %p478_p12 = por %p477_p13, %p476_p10 }
  0x1f   : > { %p479_p1 = pnand %p478_p12, %p472_p6 }
  0x21   : > { %482 = shalt.err (!%p479_p1)
}
  0x22   : > { %s483_s20 = scalar_lea.vmem %s673_s4, 128  ;;  %s582_s25 = smov [#allocation3]  }
  0x23   : > { %p484_p2 = scmp.ne.s32.totalorder %s673_s4, %s483_s20  ;;  %s488_s26 = sshll.u32 %s582_s25, 4  ;;  %s489_s26 = int_to_ptr.vmem [resolvable:$false] %s488_s26 }
  0x24   : > { %s490_s27 = scalar_lea.vmem %s489_s26, 256  ;;  %p491_p9 = scmp.lt.s32.totalorder %s673_s4, %s489_s26 }
  0x25   : > { %p486_p5 = pnand %p484_p2, %p470_p3  ;;  %p492_p4 = scmp.lt.s32.totalorder %s490_s27, %s483_s20 }
  0x27   : > { %p487_p11 = pneg %p486_p5  ;;  %p493_p7 = por %p492_p4, %p491_p9 }
  0x29   : > { %p494_p10 = pnand %p493_p7, %p487_p11 }
  0x2b   : > { %497 = shalt.err (!%p494_p10)
}
  0x2c   : > { %s583_s28 = smov 32   ;;  %s584_s29 = smov 2  }
  0x2d   : > { %398 = dma.hbm_to_vmem [thread:$0]  (!%p677_p0), %s671_s30, 128, %s673_s4, %s682_s6, %s583_s28, %s583_s28, %s584_s29  }
  0x2e   : > { %p159_p12 = scmp.lt.s32.totalorder %s580_s14, 3  ;;  %p790_p1 = scmp.ge.s32.totalorder %s580_s14, 1 }
  0x30   : > { %p160_p3 = pnand %p790_p1, %p159_p12 }
  0x31   : > { %s714_s3 = sand.u32 (!%p160_p3), 1, %s564_s10  }
  0x32   : > { %163 = sbr.rel (%p160_p3) target bundleno = 145 (0x91), region = 28  ;;  %s383_s7 = sshll.u32 (!%p160_p3), %s714_s3, 3 }
  0x33   : > { %s166_s8 = scalar_lea.sflag (!%p160_p3), [#allocation4], %s714_s3  ;;  %s169_s15 = scalar_lea.vmem (!%p160_p3), [#allocation3], %s383_s7 }
  0x39   : > { %551 = dma.done.wait (%p649_p8), %s166_s8, 128  }
  0x3a   : > { %553 = vsyncadd (%p649_p8), %s166_s8, 4294967168  ;;  %v585_v0 = vmov 0.0   ;;  %v209_v1 = vld [vmem:[%s169_s15] sm:$0x3]  ;;  %v384_v2 = vld [vmem:[%s169_s15 + $0x2] sm:$0x3] }
  0x3b   : > { %205 = vst [vmem:[#allocation2] sm:$0x3] %v585_v0  ;;  %v212_v3 = vmax.f32 %v209_v1, %v384_v2  ;;  %v385_v4 = vld [vmem:[%s169_s15 + $0x4] sm:$0x3]  ;;  %v386_v5 = vld [vmem:[%s169_s15 + $0x6] sm:$0x3] }
  0x3c   : > { %p195_p9 = scmp.lt.s32.totalorder %s572_s12, 1  ;;  %vm265_vm5 = vcmask 1041408   ;;  %s194_s6 = scalar_lea.vmem [#allocation6], %s714_s3 }
  0x3d   : > { %v215_v6 = vmax.f32 %v212_v3, %v385_v4  ;;  %s287_s16 = sshll.u32 %s194_s6, 4  ;;  %s387_s18 = sshll.u32 %s572_s12, 4  ;;  %s729_s16 = int_to_ptr.vmem [resolvable:$true] %s287_s16 }
  0x3e   : > { %s196_s30 = scalar_select %p195_p9, %s572_s12, 1 }
  0x3f   : > { %v218_v7 = vmax.f32 %v215_v6, %v386_v5  ;;  %s734_s25 = scalar_lea.hbm %s783_s2, %s387_s18  ;;  %s275_s26 = scalar_lea.sflag [#allocation5], %s714_s3 }
  0x40   : > { %s200_s5 = scalar_lea.vmem %s782_s1, %s196_s30  ;;  %s498_s27 = scalar_lea.vmem %s729_s16, 16 }
  0x41   : > { %v219_v8 = vsub.f32 %v209_v1, %v218_v7  ;;  %v226_v9 = vsub.f32 %v384_v2, %v218_v7  ;;  %v233_v10 = vsub.f32 %v385_v4, %v218_v7  ;;  %v240_v11 = vsub.f32 %v386_v5, %v218_v7  ;;  %v206_v16 = vld [vmem:[%s200_s5] sm:$0x1]  ;;  %p499_p8 = scmp.ne.s32.totalorder %s729_s16, %s498_s27  ;;  %p791_p11 = scmp.ne.s32.totalorder %s787_s22, 0 }
  0x42   : > { %v207_v17 = vunpack.c.0.s8 %v206_v16  ;;  %v256_v43 = vld [vmem:[#allocation2] sm:$0x3]  ;;  %s586_s12 = smov [#allocation6]  }
  0x43   : > { %v220_v12 = vmul.f32 1.442695, %v219_v8  ;;  %v227_v13 = vmul.f32 1.442695, %v226_v9  ;;  %v234_v14 = vmul.f32 1.442695, %v233_v10  ;;  %p500_p0 = pnand %p499_p8, %p791_p11 }
  0x44   : > { %v241_v15 = vmul.f32 1.442695, %v240_v11  ;;  %v208_v20 = vand.u32 255, %v207_v17  ;;  %s502_s28 = sshll.u32 %s586_s12, 4  ;;  %s503_s28 = int_to_ptr.vmem [resolvable:$false] %s502_s28 }
  0x45   : > { %456 = vpow2.f32 %v220_v12  ;;  %p501_p6 = pneg %p500_p0  ;;  %s504_s29 = scalar_lea.vmem %s503_s28, 32 }
  0x46   : > { %458 = vpow2.f32 %v227_v13  ;;  %vm223_vm0 = vcmp.eq.s32.totalorder %v208_v20, 0  ;;  %vm230_vm1 = vcmp.eq.s32.totalorder %v208_v20, 1  ;;  %vm237_vm2 = vcmp.eq.s32.totalorder %v208_v20, 2  ;;  %p505_p13 = scmp.lt.s32.totalorder %s729_s16, %s503_s28  ;;  %p506_p2 = scmp.lt.s32.totalorder %s504_s29, %s498_s27 }
  0x47   : > { %460 = vpow2.f32 %v234_v14  ;;  %v224_v27 = vsel %vm223_vm0, %v209_v1, 0.0  ;;  %vm244_vm3 = vcmp.eq.s32.totalorder %v208_v20, 3  ;;  %vm257_vm4 = vcmp.ne.s32.totalorder %v208_v20, 255 }
  0x48   : > { %462 = vpow2.f32 %v241_v15  ;;  %v231_v29 = vsel %vm230_vm1, %v384_v2, %v224_v27  ;;  %p507_p5 = por %p506_p2, %p505_p13 }
  0x49   : > { %v238_v31 = vsel %vm237_vm2, %v385_v4, %v231_v29 }
  0x4a   : > { %v245_v36 = vsel %vm244_vm3, %v386_v5, %v238_v31  ;;  %p508_p4 = pnand %p507_p5, %p501_p6 }
  0x4f   : > { %v457_v18 = vpop.eup %456 }
  0x50   : > { %v459_v19 = vpop.eup %458  ;;  %v225_v26 = vsel %vm223_vm0, %v457_v18, 0.0 }
  0x51   : > { %v461_v21 = vpop.eup %460  ;;  %v229_v22 = vadd.f32 %v459_v19, %v457_v18  ;;  %v232_v28 = vsel %vm230_vm1, %v459_v19, %v225_v26 }
  0x52   : > { %v463_v23 = vpop.eup %462  ;;  %v239_v30 = vsel %vm237_vm2, %v461_v21, %v232_v28 }
  0x53   : > { %v236_v24 = vadd.f32 %v461_v21, %v229_v22  ;;  %v246_v32 = vsel %vm244_vm3, %v463_v23, %v239_v30 }
  0x55   : > { %v243_v25 = vadd.f32 %v463_v23, %v236_v24 }
  0x57   : > { %464 = vlog2.f32 %v243_v25 }
  0x58   : > { %466 = vrcp.f32 %v243_v25 }
  0x61   : > { %v465_v33 = vpop.eup %464 }
  0x62   : > { %v467_v34 = vpop.eup %466  ;;  %v248_v35 = vmul.f32 0.6931472, %v465_v33 }
  0x63   : > { %v252_v37 = vmul.f32 %v467_v34, %v246_v32 }
  0x64   : > { %v249_v38 = vadd.f32 %v248_v35, %v218_v7 }
  0x65   : > { %v253_v39 = vsub.f32 1.0, %v252_v37 }
  0x66   : > { %v250_v40 = vsub.f32 %v249_v38, %v245_v36 }
  0x67   : > { %v254_v41 = vmul.f32 %v253_v39, %v253_v39 }
  0x69   : > { %v255_v42 = vmul.f32 %v254_v41, %v250_v40 }
  0x6b   : > { %v258_v44 = vsel %vm257_vm4, %v255_v42, 0.0 }
  0x6c   : > { %v259_v45 = vadd.f32 %v258_v44, %v256_v43 }
  0x6e   : > { %260 = vst [vmem:[#allocation2] sm:$0x3] %v259_v45 }
  0x75   : > { %v264_v46 = vld [vmem:[#allocation2] sm:$0x3] }
  0x76   : > { %v266_v47 = vsel %vm265_vm5, %v264_v46, 0.0 }
  0x77   : > { %v267_v48 = vrot.slane %v266_v47, 4 }
  0x79   : > { %v268_v49 = vadd.f32 %v267_v48, %v266_v47 }
  0x7b   : > { %v269_v50 = vrot.slane %v268_v49, 2 }
  0x7d   : > { %v270_v51 = vadd.f32 %v269_v50, %v268_v49 }
  0x7f   : > { %v271_v52 = vrot.slane %v270_v51, 1 }
  0x81   : > { %v272_v53 = vadd.f32 %v271_v52, %v270_v51 }
  0x83   : > { %273 = vst [vmem:[%s194_s6] sm:$0x1] %v272_v53 }
  0x84   : > { %511 = shalt.err (!%p508_p4)
}
  0x85   : > { %s512_s3 = scalar_lea.hbm %s734_s25, 16  ;;  %s516_s15 = scalar_lea.hbm %s783_s2, 32 }
  0x86   : > { %p513_p7 = scmp.ne.s32.totalorder %s734_s25, %s512_s3  ;;  %p517_p1 = scmp.lt.u32.totalorder %s734_s25, %s783_s2 }
  0x87   : > { %p518_p3 = scmp.lt.u32.totalorder %s516_s15, %s512_s3  ;;  %p520_p8 = scmp.lt.u32.totalorder %s512_s3, %s734_s25 }
  0x88   : > { %p514_p10 = pnand %p513_p7, %p791_p11 }
  0x89   : > { %p519_p9 = por %p518_p3, %p517_p1 }
  0x8a   : > { %p515_p12 = pneg %p514_p10 }
  0x8b   : > { %p521_p0 = por %p520_p8, %p519_p9 }
  0x8d   : > { %p522_p6 = pnand %p521_p0, %p515_p12 }
  0x8f   : > { %525 = shalt.err (!%p522_p6)
}
  0x90   : > { %393 = dma.vmem_to_hbm [thread:$0]  (%p791_p11), %s729_s16, 16, %s734_s25, %s275_s26  }
  0x91 PF: > { %s299_s4 = sand.u32 1, %s560_s9   ;;  %p792_p13 = scmp.ne.s32.totalorder %s788_s24, 0 }
  0x92   : > { %p793_p2 = scmp.ge.s32.totalorder %s580_s14, 2  ;;  %s300_s5 = scalar_lea.sflag [#allocation5], %s299_s4 }
  0x94   : > { %p400_p5 = pnand %p793_p2, %p792_p13 }
  0x96   : > { %555 = dma.done.wait (!%p400_p5), %s300_s5, 16  }
  0x97   : > { %557 = vsyncadd (!%p400_p5), %s300_s5, 4294967280  ;;  %s18_s14 = sadd.s32 1, %s580_s14   ;;  %s794_s9 = smov %s564_s10 }
  0x98   : > { %p15_p4 = scmp.ge.s32.totalorder %s18_s14, 4   ;;  %s795_s10 = smov %s568_s11 }
  0x99   : > { %s796_s11 = smov %s658_s23  ;;  %s797_s12 = smov %s576_s13 }
  0x9a   : > { %s798_s13 = smov %s800_s17  ;;  %17 = sbr.rel (!%p15_p4) target bundleno = 6 (0x6), region = 87 }
  0xa1   :  { %304 = vsyncpa [#allocation4], 1 }
  0xa2   :  { %306 = vsyncpa [#allocation4 + $0x1], 1 }
  0xa3   :  { %307 = vsyncpa [#allocation5], 1 }
  0xa4   :  { %309 = vsyncpa [#allocation5 + $0x1], 1 }

</bundles_post_ra>
